<compile_context>
chip_gen: v7x
topology: tpu7x:2x2x1
jax: 0.10.0
libtpu: 0.0.40
codegen_flags: <defaults>
</compile_context>

<pallas_src>
import jax
import jax.numpy as jnp
from jax.experimental import pallas as pl
from jax.experimental.pallas import tpu as pltpu


def _round_up(x: int, m: int) -> int:
    return (x + m - 1) // m * m


def _fasd_decoder_kernel(x_ref, w_ref, b_ref, o_ref):
    # MXU matmul with f32 accumulation; bias + logistic epilogue in f32.
    z = jnp.dot(x_ref[...], w_ref[...], preferred_element_type=jnp.float32)
    z = z + b_ref[...]              # (1, D_out_pad) broadcasts over the rows
    o_ref[...] = jax.nn.sigmoid(z)  # lax.logistic -> EUP, keeps VALU free


def fasd_decoder_forward(x, w, b, *, block_rows: int = 512, use_bf16: bool = False):
    """x: (B, D_in), w: (D_in, D_out), b: (D_out,) -> (B, D_out) f32."""
    B, D_in = x.shape
    D_out = w.shape[1]

    # --- lane-dense output: pad D_out up to a multiple of 128 with zeros ----
    D_out_pad = _round_up(D_out, 128)
    if D_out_pad != D_out:
        w = jnp.pad(w, ((0, 0), (0, D_out_pad - D_out)))
        b = jnp.pad(b, (0, D_out_pad - D_out))
    b2 = b.reshape(1, D_out_pad).astype(jnp.float32)

    # --- batch tiling: TB rows per grid step (multiple of 8 sublanes) -------
    TB = min(_round_up(block_rows, 8), _round_up(B, 8))
    B_pad = _round_up(B, TB)
    if B_pad != B:
        x = jnp.pad(x, ((0, B_pad - B), (0, 0)))

    in_dtype = jnp.bfloat16 if use_bf16 else jnp.float32
    x = x.astype(in_dtype)
    w = w.astype(in_dtype)
    in_size = jnp.dtype(in_dtype).itemsize

    grid = (B_pad // TB,)

    # VMEM budget (double-buffered x/out tiles + resident W/b), with headroom.
    vmem_bytes = (2 * TB * D_in * in_size
                  + 2 * TB * D_out_pad * 4
                  + D_in * D_out_pad * in_size
                  + D_out_pad * 4)
    vmem_limit = int(min(max(2 * vmem_bytes, 8 << 20), 96 << 20))

    cost = pl.CostEstimate(
        flops=2 * B_pad * D_in * D_out_pad,
        transcendentals=B_pad * D_out_pad,
        bytes_accessed=(B_pad * D_in * in_size
                        + D_in * D_out_pad * in_size
                        + D_out_pad * 4
                        + B_pad * D_out_pad * 4),
    )

    y_pad = pl.pallas_call(
        _fasd_decoder_kernel,
        out_shape=jax.ShapeDtypeStruct((B_pad, D_out_pad), jnp.float32),
        grid_spec=pltpu.PrefetchScalarGridSpec(
            num_scalar_prefetch=0,
            grid=grid,
            in_specs=[
                pl.BlockSpec((TB, D_in), lambda i: (i, 0)),        # x tile
                pl.BlockSpec((D_in, D_out_pad), lambda i: (0, 0)),  # W resident
                pl.BlockSpec((1, D_out_pad), lambda i: (0, 0)),     # b resident
            ],
            out_specs=pl.BlockSpec((TB, D_out_pad), lambda i: (i, 0)),
        ),
        compiler_params=pltpu.CompilerParams(
            dimension_semantics=("parallel",),
            vmem_limit_bytes=vmem_limit,
        ),
        cost_estimate=cost,
    )(x, w, b2)

    # Slice the zero-padded rows/columns back off.
    return y_pad[:B, :D_out]


if __name__ == "__main__":
    # Module config consistent with FASD_Decoder.__init__:
    #   cont_idx has 4 continuous cols, cat_idx has groups of 3 and 4
    #   -> output_dim = 4 + 3 + 4 = 11.
    cont_idx = [0, 1, 2, 3]
    cat_idx = [[4, 5, 6], [7, 8, 9, 10]]
    input_dim = 32
    output_dim = len([c for grp in cat_idx for c in grp]) + len(cont_idx)  # 11
    batch = 64

    key = jax.random.PRNGKey(0)
    kx, kw, kb = jax.random.split(key, 3)

    bound = 1.0 / (input_dim ** 0.5)
    x = jax.random.normal(kx, (batch, input_dim), dtype=jnp.float32)
    w = jax.random.uniform(kw, (input_dim, output_dim), minval=-bound,
                           maxval=bound, dtype=jnp.float32)
    b = jax.random.uniform(kb, (output_dim,), minval=-bound, maxval=bound,
                           dtype=jnp.float32)

    ref = jax.nn.sigmoid(x @ w + b)

    # f32 path, small block_rows so the batch grid actually has several steps.
    out = fasd_decoder_forward(x, w, b, block_rows=16, use_bf16=False)
    out = jax.block_until_ready(out)
    assert out.shape == (batch, output_dim)
    assert jnp.allclose(out, ref, atol=1e-5, rtol=1e-5)

    # bf16-input path (halves HBM traffic on v6e/v7x); f32 accumulation,
    # so only a relaxed tolerance is needed.
    out_bf16 = fasd_decoder_forward(x, w, b, use_bf16=True)
    out_bf16 = jax.block_until_ready(out_bf16)
    assert out_bf16.shape == (batch, output_dim)
    assert jnp.allclose(out_bf16, ref, atol=2e-2, rtol=2e-2)

    # TODO(synk): train_model/validate/decode (pandas + one_hot_from_probs
    # post-processing) are host-side training/inference utilities, not part of
    # the forward pass, so they are intentionally not kernelized.
    print("KERNEL_OK")
</pallas_src>

<mosaic_0001>
module attributes {stable_mosaic.version = 11 : i64} {
  func.func @_fasd_decoder_kernel(%arg0: i32, %arg1: memref<16x32xf32, #tpu.memory_space<vmem>>, %arg2: memref<32x128xf32, #tpu.memory_space<vmem>>, %arg3: memref<1x128xf32, #tpu.memory_space<vmem>>, %arg4: memref<16x128xf32, #tpu.memory_space<vmem>>) attributes {dimension_semantics = [#tpu.dimension_semantics<parallel>], iteration_bounds = array<i64: 4>, scalar_prefetch = 0 : i64, scratch_operands = 0 : i64, tpu.core_type = #tpu.core_type<tc>, window_params = [{transform_indices = @transform_0, window_bounds = array<i64: 16, 32>}, {pipeline_mode = #tpu.pipeline_mode<synchronous>, transform_indices = @transform_1, window_bounds = array<i64: 32, 128>}, {pipeline_mode = #tpu.pipeline_mode<synchronous>, transform_indices = @transform_2, window_bounds = array<i64: 1, 128>}, {transform_indices = @transform_3, window_bounds = array<i64: 16, 128>}]} {
    %c0 = arith.constant 0 : index
    %c0_0 = arith.constant 0 : index
    %0 = vector.load %arg1[%c0, %c0_0] : memref<16x32xf32, #tpu.memory_space<vmem>>, vector<16x32xf32>
    %c0_1 = arith.constant 0 : index
    %c0_2 = arith.constant 0 : index
    %1 = vector.load %arg2[%c0_1, %c0_2] : memref<32x128xf32, #tpu.memory_space<vmem>>, vector<32x128xf32>
    %cst = arith.constant dense<0.000000e+00> : vector<16x128xf32>
    %2 = tpu.matmul %0, %1, %cst {dimension_numbers = #tpu.dot_dimension_numbers<[1], [0], [0], [1], [0, 0, 1, 1], [], []>} : vector<16x32xf32>, vector<32x128xf32>, vector<16x128xf32> -> vector<16x128xf32>
    %c0_3 = arith.constant 0 : index
    %c0_4 = arith.constant 0 : index
    %3 = vector.load %arg3[%c0_3, %c0_4] : memref<1x128xf32, #tpu.memory_space<vmem>>, vector<1x128xf32>
    %4 = vector.broadcast %3 : vector<1x128xf32> to vector<16x128xf32>
    %5 = arith.addf %2, %4 : vector<16x128xf32>
    %6 = arith.negf %5 : vector<16x128xf32>
    %7 = math.exp %6 : vector<16x128xf32>
    %cst_5 = arith.constant 1.000000e+00 : f32
    %8 = vector.broadcast %cst_5 : f32 to vector<16x128xf32>
    %9 = arith.addf %8, %7 : vector<16x128xf32>
    %10 = arith.divf %8, %9 : vector<16x128xf32>
    %c0_6 = arith.constant 0 : index
    %c0_7 = arith.constant 0 : index
    %11 = vector.load %arg4[%c0_6, %c0_7] : memref<16x128xf32, #tpu.memory_space<vmem>>, vector<16x128xf32>
    tpu.vector_store %arg4[%c0_6, %c0_7], %10 {strides = array<i32>} : memref<16x128xf32, #tpu.memory_space<vmem>>, vector<16x128xf32>,
    return
  }
  func.func @transform_0(%arg0: i32) -> (i32, i32) {
    %c0_i32 = arith.constant 0 : i32
    %c0_i32_0 = arith.constant 0 : i32
    return %arg0, %c0_i32 : i32, i32
  }
  func.func @transform_1(%arg0: i32) -> (i32, i32) {
    %c0_i32 = arith.constant 0 : i32
    %c0_i32_0 = arith.constant 0 : i32
    %c0_i32_1 = arith.constant 0 : i32
    return %c0_i32, %c0_i32_0 : i32, i32
  }
  func.func @transform_2(%arg0: i32) -> (i32, i32) {
    %c0_i32 = arith.constant 0 : i32
    %c0_i32_0 = arith.constant 0 : i32
    %c0_i32_1 = arith.constant 0 : i32
    return %c0_i32, %c0_i32_0 : i32, i32
  }
  func.func @transform_3(%arg0: i32) -> (i32, i32) {
    %c0_i32 = arith.constant 0 : i32
    %c0_i32_0 = arith.constant 0 : i32
    return %arg0, %c0_i32 : i32, i32
  }
}

</mosaic_0001>

<bundles_post_ra>
// kernel: tpu_custom_call.1
= control target key start
LH: loop header
LB: loop body
LE: loop exit
PB: predicated region body
PF: predicated region fallthrough
CT: control target
= control target key end

     0   :  { %8 = vsyncpa [#allocation3], 0  ;;  %s653_s0 = inlined_call_operand.vmem [shape: f32[64,32], index: 0, kind: input, shape index: {}]   ;;  %s654_s1 = inlined_call_operand.vmem [shape: f32[32,128], index: 1, kind: input, shape index: {}]   ;;  %s655_s2 = inlined_call_operand.vmem [shape: f32[1,128], index: 2, kind: input, shape index: {}]   ;;  %s656_s3 = inlined_call_operand.hbm [shape: f32[64,128], index: 3, kind: output, shape index: {}]  }
   0x1   :  { %10 = vsyncpa [#allocation3 + $0x1], 0  ;;  %s536_s12 = smov 0   ;;  %s538_s13 = smov 0  }
   0x2   :  { %s540_s14 = smov 0   ;;  %s542_s15 = smov 0  }
   0x3 LB: > { %s557_s16 = sadd.s32 4294967295, %s511_s15   ;;  %s357_s17 = sadd.s32 4294967294, %s511_s15   ;;  %s511_s15 = sphi %s542_s15, %s662_s15   ;;  %s507_s14 = sphi %s540_s14, %s661_s14   ;;  %s503_s13 = sphi %s538_s13, %s660_s13   ;;  %s499_s12 = sphi %s536_s12, %s659_s12  }
   0x4   : > { %s561_s18 = sadd.s32 1, %s511_s15   ;;  %s91_s19 = sadd.s32 1, %s507_s14 }
   0x5   : > { %s88_s20 = ssub.s32 %s511_s15, %s561_s18  ;;  %p101_p0 = scmp.ne.s32.totalorder %s507_s14, %s503_s13 }
   0x6   : > { %p89_p1 = scmp.eq.s32.totalorder %s88_s20, 0  ;;  %p102_p2 = scmp.eq.s32.totalorder %s557_s16, 3 }
   0x7   : > { %p107_p3 = scmp.ne.s32.totalorder %s503_s13, %s499_s12  ;;  %p108_p4 = scmp.eq.s32.totalorder %s357_s17, 3 }
   0x8   : > { %s572_s21 = scalar_select %p89_p1, %s507_s14, %s91_s19  }
   0x9   : > { %p574_p5 = por %p102_p2, %p101_p0  ;;  %p578_p6 = por %p108_p4, %p107_p3 }
   0xa   : > { %p360_p7 = scmp.ge.s32.totalorder %s511_s15, 1  ;;  %p141_p8 = scmp.lt.s32.totalorder %s511_s15, 5 }
   0xc   : > { %p142_p9 = pnand %p360_p7, %p141_p8 }
   0xd   : > { %v174_v0 = vld [vmem:[%s654_s1] sm:$0xff] (!%p142_p9)  ;;  %v175_v1 = vld [vmem:[%s654_s1 + $0x8] sm:$0xff] (!%p142_p9)  ;;  %v176_v2 = vld [vmem:[%s654_s1 + $0x10] sm:$0xff] (!%p142_p9)  ;;  %s362_s30 = sshll.u32 (!%p142_p9), %s557_s16, 1  ;;  %vm185_vm0 = vcmask (!%p142_p9), 261120   ;;  %s162_s17 = sand.u32 (!%p142_p9), 1, %s503_s13  }
   0xe   : > { %145 = sbr.rel (%p142_p9) target bundleno = 282 (0x11a), region = 32  ;;  %v392_v3 = vpack.c.bf16 (!%p142_p9), %v175_v1, %v174_v0  ;;  %v177_v4 = vld [vmem:[%s654_s1 + $0x18] sm:$0xff] (!%p142_p9)  ;;  %p166_p10 = scmp.lt.s32.totalorder (!%p142_p9), %s362_s30, 7  ;;  %v364_v8 = vld [vmem:[%s655_s2] ss:$0 sm:$0xff] (!%p142_p9) }
   0xf   : > { %v396_v5 = vpack.c.bf16 (!%p142_p9), %v177_v4, %v176_v2  ;;  %s361_s19 = sshll.u32 (!%p142_p9), %s162_s17, 4  ;;  %s374_s20 = sshll.u32 (!%p142_p9), %s557_s16, 8 }
  0x10   : > { %393 = vmatprep.subr.bf16.mxu0 (!%p142_p9), %v392_v3  ;;  %s164_s24 = scalar_lea.vmem (!%p142_p9), [#allocation2], %s361_s19  ;;  %s608_s28 = scalar_lea.hbm (!%p142_p9), %s656_s3, %s374_s20 }
  0x11   : > { %395 = vmatpush3.bf16.msra.mxu0 (!%p142_p9), %v392_v3  ;;  %s295_s25 = sshll.u32 (!%p142_p9), %s164_s24, 4  ;;  %s612_s29 = scalar_lea.sflag (!%p142_p9), [#allocation3], %s162_s17  ;;  %s610_s25 = int_to_ptr.vmem [resolvable:$true] %s295_s25 }
  0x12   : > { %397 = vmatprep.subr.bf16.mxu0 (!%p142_p9), %v396_v5  ;;  %s513_s16 = smov (!%p142_p9), [#allocation2]  }
  0x13   : > { %s453_s4 = sshll.u32 (!%p142_p9), %s513_s16, 4  ;;  %s454_s4 = int_to_ptr.vmem [resolvable:$false] %s453_s4 }
  0x14   : > { %s455_s5 = scalar_lea.vmem (!%p142_p9), %s454_s4, 512  ;;  %p456_p0 = scmp.lt.s32.totalorder (!%p142_p9), %s610_s25, %s454_s4 }
  0x15   : > { %s664_s30 = smov (!%p166_p10, %s362_s30), 7  ;;  %399 = vmatpush3.bf16.msra.mxu0 %v396_v5 }
  0x16   : > { %s363_s6 = sshll.u32 %s664_s30, 3  ;;  %s449_s30 = scalar_lea.vmem %s610_s25, 256 }
  0x17   : > { %s169_s9 = scalar_lea.vmem %s653_s0, %s363_s6  ;;  %p450_p11 = scmp.ne.s32.totalorder %s610_s25, %s449_s30 }
  0x18   : > { %v172_v6 = vld [vmem:[%s169_s9] sm:$0xff]  ;;  %v173_v7 = vld [vmem:[%s169_s9 + $0x8] sm:$0xff]  ;;  %p457_p1 = scmp.lt.s32.totalorder %s455_s5, %s449_s30 }
  0x19   : > { %389 = vmatprep.mubr.msk.f32.mxu0 %vm185_vm0, %v172_v6  ;;  %p451_p12 = pnand %p450_p11, %p574_p5 }
  0x1a   : > { %390 = vmatmul.mubr.msk.f32.vlgmr.msra.gmra.mrb[0].mxu0 %vm185_vm0, %v173_v7  ;;  %p458_p2 = por %p457_p1, %p456_p0 }
  0x1b   : > { %p452_p13 = pneg %p451_p12 }
  0x1d   : > { %p459_p3 = pnand %p458_p2, %p452_p13 }
  0xed   : > { %v391_v9 = vpop.f32.mrb[0].mxu0 }
  0xee   : > { %v264_v10 = vadd.f32 %v391_v9, %v364_v8  ;;  %v258_v11 = vpop.f32.mrb[1].mxu0 }
  0xef   : > { %v259_v12 = vadd.f32 %v364_v8, %v258_v11 }
  0xf0   : > { %v368_v13 = vmul.f32 -1.442695, %v264_v10 }
  0xf1   : > { %v367_v14 = vmul.f32 -1.442695, %v259_v12 }
  0xf2   : > { %441 = vpow2.f32 %v368_v13 }
  0xf3   : > { %443 = vpow2.f32 %v367_v14 }
  0xfc   : > { %v442_v15 = vpop.eup %441 }
  0xfd   : > { %v444_v16 = vpop.eup %443  ;;  %v274_v17 = vadd.f32 1.0, %v442_v15 }
  0xfe   : > { %v273_v18 = vadd.f32 1.0, %v444_v16 }
  0xff   : > { %445 = vrcp.f32 %v274_v17 }
 0x100   : > { %447 = vrcp.f32 %v273_v18 }
 0x109   : > { %v446_v19 = vpop.eup %445 }
 0x10a   : > { %v448_v20 = vpop.eup %447  ;;  %280 = vst [vmem:[%s164_s24 + $0x8] sm:$0xff] %v446_v19 }
 0x10b   : > { %279 = vst [vmem:[%s164_s24] sm:$0xff] %v448_v20 }
 0x10c   : > { %462 = shalt.err (!%p459_p3)
}
 0x10d   : > { %s463_s6 = scalar_lea.hbm %s608_s28, 256  ;;  %s467_s9 = scalar_lea.hbm %s656_s3, 1024 }
 0x10e   : > { %p464_p4 = scmp.ne.s32.totalorder %s608_s28, %s463_s6  ;;  %p468_p9 = scmp.lt.u32.totalorder %s608_s28, %s656_s3 }
 0x10f   : > { %p469_p10 = scmp.lt.u32.totalorder %s467_s9, %s463_s6  ;;  %p471_p12 = scmp.lt.u32.totalorder %s463_s6, %s608_s28 }
 0x110   : > { %p465_p7 = pnand %p464_p4, %p574_p5 }
 0x111   : > { %p470_p11 = por %p469_p10, %p468_p9 }
 0x112   : > { %p466_p8 = pneg %p465_p7 }
 0x113   : > { %p472_p13 = por %p471_p12, %p470_p11 }
 0x115   : > { %p473_p0 = pnand %p472_p13, %p466_p8 }
 0x117   : > { %476 = shalt.err (!%p473_p0)
}
 0x118   : > { %s514_s17 = smov 128   ;;  %s515_s19 = smov 8  }
 0x119   : > { %400 = dma.vmem_to_hbm [thread:$0]  (%p574_p5), %s610_s25, 256, %s608_s28, %s612_s29, %s514_s17, %s514_s17, %s515_s19  }
 0x11a PF: > { %p406_p1 = scmp.ge.s32.totalorder %s511_s15, 2  ;;  %s310_s20 = sand.u32 1, %s499_s12  }
 0x11b   : > { %s311_s24 = scalar_lea.sflag [#allocation3], %s310_s20 }
 0x11c   : > { %p403_p2 = pnand %p406_p1, %p578_p6 }
 0x11e   : > { %494 = dma.done.wait (!%p403_p2), %s311_s24, 256  }
 0x11f   : > { %496 = vsyncadd (!%p403_p2), %s311_s24, 4294967040  ;;  %p13_p3 = scmp.ge.s32.totalorder %s561_s18, 6   ;;  %s659_s12 = smov %s503_s13 }
 0x120   : > { %s660_s13 = smov %s507_s14  ;;  %s661_s14 = smov %s572_s21 }
 0x121   : > { %s662_s15 = smov %s561_s18  ;;  %15 = sbr.rel (!%p13_p3) target bundleno = 3 (0x3), region = 67 }
 0x128   :  { %316 = vsyncpa [#allocation3], 1 }
 0x129   :  { %318 = vsyncpa [#allocation3 + $0x1], 1 }

</bundles_post_ra>
